<compile_context>
chip_gen: v5e
topology: v5e:2x2
jax: 0.10.0
libtpu: 0.0.40
codegen_flags: <defaults>
</compile_context>

<pallas_src>
import functools

import jax
import jax.numpy as jnp
from jax import lax
from jax.experimental import pallas as pl
from jax.experimental.pallas import tpu as pltpu


def make_fire_kernel(*, skip: bool, co2: int, H: int, W: int):
    HW = H * W

    def kernel(x_ref, w1_ref, b1_ref, w2_ref, b2a_ref, w3_ref, b2b_ref,
               m_ref, o_ref):
        # x_ref : (Cin, HW)     one image, channels on sublanes, spatial on lanes
        # w1_ref: (Cs, Cin)     squeeze 1x1 weights, BN1 scale folded in
        # b1_ref: (Cs, 1)       BN1 shift
        # w2_ref: (Co2, Cs)     expand 1x1 weights, BN2[:Co2] scale folded in
        # b2a_ref: (Co2, 1)     BN2[:Co2] shift
        # w3_ref: (9, Co2, 1)   depthwise taps, BN2[Co2:] scale folded in
        # b2b_ref: (Co2, 1)     BN2[Co2:] shift
        # m_ref : (9, 1, HW)    zero-padding boundary masks per tap
        # o_ref : (Co, HW)
        x = x_ref[...]                                          # (Cin, HW)

        # --- squeeze 1x1 conv (+ folded BN1) ---
        s = jnp.dot(w1_ref[...], x,
                    preferred_element_type=jnp.float32) + b1_ref[...]  # (Cs, HW)

        # --- expand branch A: 1x1 conv (+ folded BN2 first half) ---
        br1 = jnp.dot(w2_ref[...], s,
                      preferred_element_type=jnp.float32) + b2a_ref[...]
        if skip:
            br1 = br1 + x[:co2, :]
        o_ref[:co2, :] = jnp.maximum(br1, 0.0).astype(o_ref.dtype)

        # --- expand branch B: depthwise 3x3, padding=1 (+ folded BN2 2nd half)
        # 9-tap shifted sum: lane rolls (XLU) + precomputed boundary masks.
        acc = s * w3_ref[4] + b2b_ref[...]                      # centre tap
        for t in range(9):
            if t == 4:
                continue
            dh, dw = t // 3 - 1, t % 3 - 1
            shift = (-(dh * W + dw)) % HW
            shifted = pltpu.roll(s, shift, axis=1)   # shifted[p] = s[p + dh*W + dw]
            acc = acc + (shifted * m_ref[t]) * w3_ref[t]
        if skip:
            acc = acc + x[co2:, :]
        o_ref[co2:, :] = jnp.maximum(acc, 0.0).astype(o_ref.dtype)

    return kernel


def _make_boundary_masks(H, W):
    """(9, 1, H*W) float32: 1 where the shifted tap stays inside the image."""
    HW = H * W
    pos = jnp.arange(HW)
    hh, ww = pos // W, pos % W
    rows = []
    for t in range(9):
        dh, dw = t // 3 - 1, t % 3 - 1
        ok = ((hh + dh >= 0) & (hh + dh < H) &
              (ww + dw >= 0) & (ww + dw < W))
        rows.append(ok.astype(jnp.float32))
    return jnp.stack(rows).reshape(9, 1, HW)


def fire_module_forward(x_nchw, w1f, b1, w2f, b2a, w3f9, b2b, masks, *, skip):
    """x_nchw: (N, Cin, H, W) f32.  Returns (N, Co, H, W) f32."""
    N, Cin, H, W = x_nchw.shape
    HW = H * W
    Cs = w1f.shape[0]
    Co2 = w2f.shape[0]
    Co = 2 * Co2

    x = x_nchw.reshape(N, Cin, HW)                  # free: already channels-major

    out = pl.pallas_call(
        make_fire_kernel(skip=skip, co2=Co2, H=H, W=W),
        out_shape=jax.ShapeDtypeStruct((N, Co, HW), jnp.float32),
        grid=(N,),
        in_specs=[
            pl.BlockSpec((None, Cin, HW), lambda n: (n, 0, 0)),   # x (batch dim squeezed)
            pl.BlockSpec((Cs, Cin), lambda n: (0, 0)),            # w1f
            pl.BlockSpec((Cs, 1), lambda n: (0, 0)),              # b1
            pl.BlockSpec((Co2, Cs), lambda n: (0, 0)),            # w2f
            pl.BlockSpec((Co2, 1), lambda n: (0, 0)),             # b2a
            pl.BlockSpec((9, Co2, 1), lambda n: (0, 0, 0)),       # w3f9
            pl.BlockSpec((Co2, 1), lambda n: (0, 0)),             # b2b
            pl.BlockSpec((9, 1, HW), lambda n: (0, 0, 0)),        # masks
        ],
        out_specs=pl.BlockSpec((None, Co, HW), lambda n: (n, 0, 0)),
        compiler_params=pltpu.CompilerParams(
            dimension_semantics=("parallel",)),                   # v7x: 2 TCs
    )(x, w1f, b1, w2f, b2a, w3f9, b2b, masks)

    return out.reshape(N, Co, H, W)


def _fold_bn(gamma, beta, mean, var, eps=1e-5):
    scale = gamma / jnp.sqrt(var + eps)
    shift = beta - mean * scale
    return scale, shift


def _ref_forward(x, w1_oihw, bn1, w2_oihw, w3_oihw, bn2, skip, eps=1e-5):
    """Pure-JAX reference mimicking the PyTorch module (eval-mode BN)."""
    dn = ("NCHW", "OIHW", "NCHW")

    def bn(y, params):
        gamma, beta, mean, var = params
        sc = (gamma / jnp.sqrt(var + eps))[None, :, None, None]
        return (y - mean[None, :, None, None]) * sc + beta[None, :, None, None]

    y = lax.conv_general_dilated(x, w1_oihw, (1, 1), "VALID",
                                 dimension_numbers=dn)
    y = bn(y, bn1)
    a = lax.conv_general_dilated(y, w2_oihw, (1, 1), "VALID",
                                 dimension_numbers=dn)
    b = lax.conv_general_dilated(y, w3_oihw, (1, 1), ((1, 1), (1, 1)),
                                 dimension_numbers=dn,
                                 feature_group_count=w3_oihw.shape[0])
    z = jnp.concatenate([a, b], axis=1)
    z = bn(z, bn2)
    if skip:
        z = z + x
    return jnp.maximum(z, 0.0)


if __name__ == "__main__":
    # Module config (small, skip path active: stride=1 and inp_dim == out_dim)
    inp_dim, out_dim, sr, stride = 8, 8, 2, 1
    N, H, W = 2, 16, 16
    Cs = out_dim // sr          # squeeze channels   = 4
    Co2 = out_dim // 2          # per-branch expand  = 4
    Co = out_dim                # total out channels = 8
    assert Co2 == Cs, "depthwise multiplier must be 1 (sr == 2)"
    assert stride == 1          # TODO(synk): stride>1 path not implemented
    skip = (stride == 1 and inp_dim == out_dim)

    key = jax.random.PRNGKey(0)
    ks = jax.random.split(key, 12)

    # Deterministic parameter init (PyTorch-layout weights)
    w1_oihw = 0.1 * jax.random.normal(ks[0], (Cs, inp_dim, 1, 1), jnp.float32)
    w2_oihw = 0.1 * jax.random.normal(ks[1], (Co2, Cs, 1, 1), jnp.float32)
    w3_oihw = 0.1 * jax.random.normal(ks[2], (Co2, 1, 3, 3), jnp.float32)

    gamma1 = 1.0 + 0.1 * jax.random.normal(ks[3], (Cs,), jnp.float32)
    beta1 = 0.1 * jax.random.normal(ks[4], (Cs,), jnp.float32)
    mean1 = 0.1 * jax.random.normal(ks[5], (Cs,), jnp.float32)
    var1 = 1.0 + 0.1 * jnp.abs(jax.random.normal(ks[6], (Cs,), jnp.float32))

    gamma2 = 1.0 + 0.1 * jax.random.normal(ks[7], (Co,), jnp.float32)
    beta2 = 0.1 * jax.random.normal(ks[8], (Co,), jnp.float32)
    mean2 = 0.1 * jax.random.normal(ks[9], (Co,), jnp.float32)
    var2 = 1.0 + 0.1 * jnp.abs(jax.random.normal(ks[10], (Co,), jnp.float32))

    # --- Host-side parameter prep: fold BN scales into conv weights ---
    sc1, sh1 = _fold_bn(gamma1, beta1, mean1, var1)
    sc2, sh2 = _fold_bn(gamma2, beta2, mean2, var2)

    w1f = w1_oihw[:, :, 0, 0] * sc1[:, None]                     # (Cs, Cin)
    b1 = sh1.reshape(Cs, 1)
    w2f = w2_oihw[:, :, 0, 0] * sc2[:Co2, None]                  # (Co2, Cs)
    b2a = sh2[:Co2].reshape(Co2, 1)
    w3_flat = w3_oihw[:, 0].reshape(Co2, 9) * sc2[Co2:, None]    # (Co2, 9)
    w3f9 = jnp.transpose(w3_flat).reshape(9, Co2, 1)             # (9, Co2, 1)
    b2b = sh2[Co2:].reshape(Co2, 1)
    masks = _make_boundary_masks(H, W)                           # (9, 1, H*W)

    # Input (NCHW, like PyTorch)
    x = jax.random.normal(ks[11], (N, inp_dim, H, W), jnp.float32)

    run = jax.jit(functools.partial(fire_module_forward, skip=skip))
    y = run(x, w1f, b1, w2f, b2a, w3f9, b2b, masks)
    y = jax.block_until_ready(y)

    # Sanity-check against a pure-JAX reference of the PyTorch forward.
    y_ref = _ref_forward(x, w1_oihw, (gamma1, beta1, mean1, var1),
                         w2_oihw, w3_oihw, (gamma2, beta2, mean2, var2), skip)
    assert y.shape == (N, Co, H, W)
    assert jnp.allclose(y, y_ref, atol=1e-4, rtol=1e-4), "mismatch vs reference"

    print("KERNEL_OK")
</pallas_src>

<mosaic_0001>
module attributes {stable_mosaic.version = 11 : i64} {
  func.func @kernel(%arg0: i32, %arg1: memref<1x8x256xf32, #tpu.memory_space<vmem>>, %arg2: memref<4x8xf32, #tpu.memory_space<vmem>>, %arg3: memref<4x1xf32, #tpu.memory_space<vmem>>, %arg4: memref<4x4xf32, #tpu.memory_space<vmem>>, %arg5: memref<4x1xf32, #tpu.memory_space<vmem>>, %arg6: memref<9x4x1xf32, #tpu.memory_space<vmem>>, %arg7: memref<4x1xf32, #tpu.memory_space<vmem>>, %arg8: memref<9x1x256xf32, #tpu.memory_space<vmem>>, %arg9: memref<1x8x256xf32, #tpu.memory_space<vmem>>) attributes {dimension_semantics = [#tpu.dimension_semantics<parallel>], iteration_bounds = array<i64: 2>, scalar_prefetch = 0 : i64, scratch_operands = 0 : i64, tpu.core_type = #tpu.core_type<tc>, window_params = [{transform_indices = @transform_0, window_bounds = array<i64: 1, 8, 256>}, {pipeline_mode = #tpu.pipeline_mode<synchronous>, transform_indices = @transform_1, window_bounds = array<i64: 4, 8>}, {pipeline_mode = #tpu.pipeline_mode<synchronous>, transform_indices = @transform_2, window_bounds = array<i64: 4, 1>}, {pipeline_mode = #tpu.pipeline_mode<synchronous>, transform_indices = @transform_3, window_bounds = array<i64: 4, 4>}, {pipeline_mode = #tpu.pipeline_mode<synchronous>, transform_indices = @transform_4, window_bounds = array<i64: 4, 1>}, {pipeline_mode = #tpu.pipeline_mode<synchronous>, transform_indices = @transform_5, window_bounds = array<i64: 9, 4, 1>}, {pipeline_mode = #tpu.pipeline_mode<synchronous>, transform_indices = @transform_6, window_bounds = array<i64: 4, 1>}, {pipeline_mode = #tpu.pipeline_mode<synchronous>, transform_indices = @transform_7, window_bounds = array<i64: 9, 1, 256>}, {transform_indices = @transform_8, window_bounds = array<i64: 1, 8, 256>}]} {
    %c0 = arith.constant 0 : index
    %c0_0 = arith.constant 0 : index
    %c0_1 = arith.constant 0 : index
    %0 = vector.load %arg1[%c0, %c0_0, %c0_1] : memref<1x8x256xf32, #tpu.memory_space<vmem>>, vector<1x8x256xf32>
    %1 = vector.shape_cast %0 : vector<1x8x256xf32> to vector<8x256xf32>
    %c0_2 = arith.constant 0 : index
    %c0_3 = arith.constant 0 : index
    %2 = vector.load %arg2[%c0_2, %c0_3] : memref<4x8xf32, #tpu.memory_space<vmem>>, vector<4x8xf32>
    %cst = arith.constant dense<0.000000e+00> : vector<4x256xf32>
    %3 = tpu.matmul %2, %1, %cst {dimension_numbers = #tpu.dot_dimension_numbers<[1], [0], [0], [1], [0, 0, 1, 1], [], []>} : vector<4x8xf32>, vector<8x256xf32>, vector<4x256xf32> -> vector<4x256xf32>
    %c0_4 = arith.constant 0 : index
    %c0_5 = arith.constant 0 : index
    %4 = vector.load %arg3[%c0_4, %c0_5] : memref<4x1xf32, #tpu.memory_space<vmem>>, vector<4x1xf32>
    %5 = vector.broadcast %4 : vector<4x1xf32> to vector<4x256xf32>
    %6 = arith.addf %3, %5 : vector<4x256xf32>
    %c0_6 = arith.constant 0 : index
    %c0_7 = arith.constant 0 : index
    %7 = vector.load %arg4[%c0_6, %c0_7] : memref<4x4xf32, #tpu.memory_space<vmem>>, vector<4x4xf32>
    %cst_8 = arith.constant dense<0.000000e+00> : vector<4x256xf32>
    %8 = tpu.matmul %7, %6, %cst_8 {dimension_numbers = #tpu.dot_dimension_numbers<[1], [0], [0], [1], [0, 0, 1, 1], [], []>} : vector<4x4xf32>, vector<4x256xf32>, vector<4x256xf32> -> vector<4x256xf32>
    %c0_9 = arith.constant 0 : index
    %c0_10 = arith.constant 0 : index
    %9 = vector.load %arg5[%c0_9, %c0_10] : memref<4x1xf32, #tpu.memory_space<vmem>>, vector<4x1xf32>
    %10 = vector.broadcast %9 : vector<4x1xf32> to vector<4x256xf32>
    %11 = arith.addf %8, %10 : vector<4x256xf32>
    %12 = vector.extract_strided_slice %1 {offsets = [0, 0], sizes = [4, 256], strides = [1, 1]} : vector<8x256xf32> to vector<4x256xf32>
    %13 = arith.addf %11, %12 : vector<4x256xf32>
    %cst_11 = arith.constant 0.000000e+00 : f32
    %14 = vector.broadcast %cst_11 : f32 to vector<4x256xf32>
    %15 = arith.maximumf %13, %14 : vector<4x256xf32>
    %c0_12 = arith.constant 0 : index
    %c0_13 = arith.constant 0 : index
    %c0_14 = arith.constant 0 : index
    %16 = vector.load %arg9[%c0_12, %c0_13, %c0_14] : memref<1x8x256xf32, #tpu.memory_space<vmem>>, vector<1x4x256xf32>
    %17 = vector.shape_cast %16 : vector<1x4x256xf32> to vector<4x256xf32>
    %18 = vector.shape_cast %15 : vector<4x256xf32> to vector<1x4x256xf32>
    tpu.vector_store %arg9[%c0_12, %c0_13, %c0_14], %18 {strides = array<i32>} : memref<1x8x256xf32, #tpu.memory_space<vmem>>, vector<1x4x256xf32>,
    %c4 = arith.constant 4 : index
    %c0_15 = arith.constant 0 : index
    %c0_16 = arith.constant 0 : index
    %19 = vector.load %arg6[%c4, %c0_15, %c0_16] : memref<9x4x1xf32, #tpu.memory_space<vmem>>, vector<1x4x1xf32>
    %20 = vector.shape_cast %19 : vector<1x4x1xf32> to vector<4x1xf32>
    %21 = vector.broadcast %20 : vector<4x1xf32> to vector<4x256xf32>
    %22 = arith.mulf %6, %21 : vector<4x256xf32>
    %c0_17 = arith.constant 0 : index
    %c0_18 = arith.constant 0 : index
    %23 = vector.load %arg7[%c0_17, %c0_18] : memref<4x1xf32, #tpu.memory_space<vmem>>, vector<4x1xf32>
    %24 = vector.broadcast %23 : vector<4x1xf32> to vector<4x256xf32>
    %25 = arith.addf %22, %24 : vector<4x256xf32>
    %c17_i32 = arith.constant 17 : i32
    %26 = tpu.dynamic_rotate %6 by %c17_i32 dim 1 : vector<4x256xf32>, i32 -> vector<4x256xf32>
    %c0_19 = arith.constant 0 : index
    %c0_20 = arith.constant 0 : index
    %c0_21 = arith.constant 0 : index
    %27 = vector.load %arg8[%c0_19, %c0_20, %c0_21] : memref<9x1x256xf32, #tpu.memory_space<vmem>>, vector<1x1x256xf32>
    %28 = vector.shape_cast %27 : vector<1x1x256xf32> to vector<1x256xf32>
    %29 = vector.broadcast %28 : vector<1x256xf32> to vector<4x256xf32>
    %30 = arith.mulf %26, %29 : vector<4x256xf32>
    %c0_22 = arith.constant 0 : index
    %c0_23 = arith.constant 0 : index
    %c0_24 = arith.constant 0 : index
    %31 = vector.load %arg6[%c0_22, %c0_23, %c0_24] : memref<9x4x1xf32, #tpu.memory_space<vmem>>, vector<1x4x1xf32>
    %32 = vector.shape_cast %31 : vector<1x4x1xf32> to vector<4x1xf32>
    %33 = vector.broadcast %32 : vector<4x1xf32> to vector<4x256xf32>
    %34 = arith.mulf %30, %33 : vector<4x256xf32>
    %35 = arith.addf %25, %34 : vector<4x256xf32>
    %c16_i32 = arith.constant 16 : i32
    %36 = tpu.dynamic_rotate %6 by %c16_i32 dim 1 : vector<4x256xf32>, i32 -> vector<4x256xf32>
    %c1 = arith.constant 1 : index
    %c0_25 = arith.constant 0 : index
    %c0_26 = arith.constant 0 : index
    %37 = vector.load %arg8[%c1, %c0_25, %c0_26] : memref<9x1x256xf32, #tpu.memory_space<vmem>>, vector<1x1x256xf32>
    %38 = vector.shape_cast %37 : vector<1x1x256xf32> to vector<1x256xf32>
    %39 = vector.broadcast %38 : vector<1x256xf32> to vector<4x256xf32>
    %40 = arith.mulf %36, %39 : vector<4x256xf32>
    %c1_27 = arith.constant 1 : index
    %c0_28 = arith.constant 0 : index
    %c0_29 = arith.constant 0 : index
    %41 = vector.load %arg6[%c1_27, %c0_28, %c0_29] : memref<9x4x1xf32, #tpu.memory_space<vmem>>, vector<1x4x1xf32>
    %42 = vector.shape_cast %41 : vector<1x4x1xf32> to vector<4x1xf32>
    %43 = vector.broadcast %42 : vector<4x1xf32> to vector<4x256xf32>
    %44 = arith.mulf %40, %43 : vector<4x256xf32>
    %45 = arith.addf %35, %44 : vector<4x256xf32>
    %c15_i32 = arith.constant 15 : i32
    %46 = tpu.dynamic_rotate %6 by %c15_i32 dim 1 : vector<4x256xf32>, i32 -> vector<4x256xf32>
    %c2 = arith.constant 2 : index
    %c0_30 = arith.constant 0 : index
    %c0_31 = arith.constant 0 : index
    %47 = vector.load %arg8[%c2, %c0_30, %c0_31] : memref<9x1x256xf32, #tpu.memory_space<vmem>>, vector<1x1x256xf32>
    %48 = vector.shape_cast %47 : vector<1x1x256xf32> to vector<1x256xf32>
    %49 = vector.broadcast %48 : vector<1x256xf32> to vector<4x256xf32>
    %50 = arith.mulf %46, %49 : vector<4x256xf32>
    %c2_32 = arith.constant 2 : index
    %c0_33 = arith.constant 0 : index
    %c0_34 = arith.constant 0 : index
    %51 = vector.load %arg6[%c2_32, %c0_33, %c0_34] : memref<9x4x1xf32, #tpu.memory_space<vmem>>, vector<1x4x1xf32>
    %52 = vector.shape_cast %51 : vector<1x4x1xf32> to vector<4x1xf32>
    %53 = vector.broadcast %52 : vector<4x1xf32> to vector<4x256xf32>
    %54 = arith.mulf %50, %53 : vector<4x256xf32>
    %55 = arith.addf %45, %54 : vector<4x256xf32>
    %c1_i32 = arith.constant 1 : i32
    %56 = tpu.dynamic_rotate %6 by %c1_i32 dim 1 : vector<4x256xf32>, i32 -> vector<4x256xf32>
    %c3 = arith.constant 3 : index
    %c0_35 = arith.constant 0 : index
    %c0_36 = arith.constant 0 : index
    %57 = vector.load %arg8[%c3, %c0_35, %c0_36] : memref<9x1x256xf32, #tpu.memory_space<vmem>>, vector<1x1x256xf32>
    %58 = vector.shape_cast %57 : vector<1x1x256xf32> to vector<1x256xf32>
    %59 = vector.broadcast %58 : vector<1x256xf32> to vector<4x256xf32>
    %60 = arith.mulf %56, %59 : vector<4x256xf32>
    %c3_37 = arith.constant 3 : index
    %c0_38 = arith.constant 0 : index
    %c0_39 = arith.constant 0 : index
    %61 = vector.load %arg6[%c3_37, %c0_38, %c0_39] : memref<9x4x1xf32, #tpu.memory_space<vmem>>, vector<1x4x1xf32>
    %62 = vector.shape_cast %61 : vector<1x4x1xf32> to vector<4x1xf32>
    %63 = vector.broadcast %62 : vector<4x1xf32> to vector<4x256xf32>
    %64 = arith.mulf %60, %63 : vector<4x256xf32>
    %65 = arith.addf %55, %64 : vector<4x256xf32>
    %c255_i32 = arith.constant 255 : i32
    %66 = tpu.dynamic_rotate %6 by %c255_i32 dim 1 : vector<4x256xf32>, i32 -> vector<4x256xf32>
    %c5 = arith.constant 5 : index
    %c0_40 = arith.constant 0 : index
    %c0_41 = arith.constant 0 : index
    %67 = vector.load %arg8[%c5, %c0_40, %c0_41] : memref<9x1x256xf32, #tpu.memory_space<vmem>>, vector<1x1x256xf32>
    %68 = vector.shape_cast %67 : vector<1x1x256xf32> to vector<1x256xf32>
    %69 = vector.broadcast %68 : vector<1x256xf32> to vector<4x256xf32>
    %70 = arith.mulf %66, %69 : vector<4x256xf32>
    %c5_42 = arith.constant 5 : index
    %c0_43 = arith.constant 0 : index
    %c0_44 = arith.constant 0 : index
    %71 = vector.load %arg6[%c5_42, %c0_43, %c0_44] : memref<9x4x1xf32, #tpu.memory_space<vmem>>, vector<1x4x1xf32>
    %72 = vector.shape_cast %71 : vector<1x4x1xf32> to vector<4x1xf32>
    %73 = vector.broadcast %72 : vector<4x1xf32> to vector<4x256xf32>
    %74 = arith.mulf %70, %73 : vector<4x256xf32>
    %75 = arith.addf %65, %74 : vector<4x256xf32>
    %c241_i32 = arith.constant 241 : i32
    %76 = tpu.dynamic_rotate %6 by %c241_i32 dim 1 : vector<4x256xf32>, i32 -> vector<4x256xf32>
    %c6 = arith.constant 6 : index
    %c0_45 = arith.constant 0 : index
    %c0_46 = arith.constant 0 : index
    %77 = vector.load %arg8[%c6, %c0_45, %c0_46] : memref<9x1x256xf32, #tpu.memory_space<vmem>>, vector<1x1x256xf32>
    %78 = vector.shape_cast %77 : vector<1x1x256xf32> to vector<1x256xf32>
    %79 = vector.broadcast %78 : vector<1x256xf32> to vector<4x256xf32>
    %80 = arith.mulf %76, %79 : vector<4x256xf32>
    %c6_47 = arith.constant 6 : index
    %c0_48 = arith.constant 0 : index
    %c0_49 = arith.constant 0 : index
    %81 = vector.load %arg6[%c6_47, %c0_48, %c0_49] : memref<9x4x1xf32, #tpu.memory_space<vmem>>, vector<1x4x1xf32>
    %82 = vector.shape_cast %81 : vector<1x4x1xf32> to vector<4x1xf32>
    %83 = vector.broadcast %82 : vector<4x1xf32> to vector<4x256xf32>
    %84 = arith.mulf %80, %83 : vector<4x256xf32>
    %85 = arith.addf %75, %84 : vector<4x256xf32>
    %c240_i32 = arith.constant 240 : i32
    %86 = tpu.dynamic_rotate %6 by %c240_i32 dim 1 : vector<4x256xf32>, i32 -> vector<4x256xf32>
    %c7 = arith.constant 7 : index
    %c0_50 = arith.constant 0 : index
    %c0_51 = arith.constant 0 : index
    %87 = vector.load %arg8[%c7, %c0_50, %c0_51] : memref<9x1x256xf32, #tpu.memory_space<vmem>>, vector<1x1x256xf32>
    %88 = vector.shape_cast %87 : vector<1x1x256xf32> to vector<1x256xf32>
    %89 = vector.broadcast %88 : vector<1x256xf32> to vector<4x256xf32>
    %90 = arith.mulf %86, %89 : vector<4x256xf32>
    %c7_52 = arith.constant 7 : index
    %c0_53 = arith.constant 0 : index
    %c0_54 = arith.constant 0 : index
    %91 = vector.load %arg6[%c7_52, %c0_53, %c0_54] : memref<9x4x1xf32, #tpu.memory_space<vmem>>, vector<1x4x1xf32>
    %92 = vector.shape_cast %91 : vector<1x4x1xf32> to vector<4x1xf32>
    %93 = vector.broadcast %92 : vector<4x1xf32> to vector<4x256xf32>
    %94 = arith.mulf %90, %93 : vector<4x256xf32>
    %95 = arith.addf %85, %94 : vector<4x256xf32>
    %c239_i32 = arith.constant 239 : i32
    %96 = tpu.dynamic_rotate %6 by %c239_i32 dim 1 : vector<4x256xf32>, i32 -> vector<4x256xf32>
    %c8 = arith.constant 8 : index
    %c0_55 = arith.constant 0 : index
    %c0_56 = arith.constant 0 : index
    %97 = vector.load %arg8[%c8, %c0_55, %c0_56] : memref<9x1x256xf32, #tpu.memory_space<vmem>>, vector<1x1x256xf32>
    %98 = vector.shape_cast %97 : vector<1x1x256xf32> to vector<1x256xf32>
    %99 = vector.broadcast %98 : vector<1x256xf32> to vector<4x256xf32>
    %100 = arith.mulf %96, %99 : vector<4x256xf32>
    %c8_57 = arith.constant 8 : index
    %c0_58 = arith.constant 0 : index
    %c0_59 = arith.constant 0 : index
    %101 = vector.load %arg6[%c8_57, %c0_58, %c0_59] : memref<9x4x1xf32, #tpu.memory_space<vmem>>, vector<1x4x1xf32>
    %102 = vector.shape_cast %101 : vector<1x4x1xf32> to vector<4x1xf32>
    %103 = vector.broadcast %102 : vector<4x1xf32> to vector<4x256xf32>
    %104 = arith.mulf %100, %103 : vector<4x256xf32>
    %105 = arith.addf %95, %104 : vector<4x256xf32>
    %106 = vector.extract_strided_slice %1 {offsets = [4, 0], sizes = [4, 256], strides = [1, 1]} : vector<8x256xf32> to vector<4x256xf32>
    %107 = arith.addf %105, %106 : vector<4x256xf32>
    %cst_60 = arith.constant 0.000000e+00 : f32
    %108 = vector.broadcast %cst_60 : f32 to vector<4x256xf32>
    %109 = arith.maximumf %107, %108 : vector<4x256xf32>
    %c0_61 = arith.constant 0 : index
    %c4_62 = arith.constant 4 : index
    %c0_63 = arith.constant 0 : index
    %110 = vector.load %arg9[%c0_61, %c4_62, %c0_63] : memref<1x8x256xf32, #tpu.memory_space<vmem>>, vector<1x4x256xf32>
    %111 = vector.shape_cast %110 : vector<1x4x256xf32> to vector<4x256xf32>
    %112 = vector.shape_cast %109 : vector<4x256xf32> to vector<1x4x256xf32>
    tpu.vector_store %arg9[%c0_61, %c4_62, %c0_63], %112 {strides = array<i32>} : memref<1x8x256xf32, #tpu.memory_space<vmem>>, vector<1x4x256xf32>,
    return
  }
  func.func @transform_0(%arg0: i32) -> (i32, i32, i32) {
    %c0_i32 = arith.constant 0 : i32
    %c0_i32_0 = arith.constant 0 : i32
    %c0_i32_1 = arith.constant 0 : i32
    return %arg0, %c0_i32, %c0_i32_0 : i32, i32, i32
  }
  func.func @transform_1(%arg0: i32) -> (i32, i32) {
    %c0_i32 = arith.constant 0 : i32
    %c0_i32_0 = arith.constant 0 : i32
    %c0_i32_1 = arith.constant 0 : i32
    return %c0_i32, %c0_i32_0 : i32, i32
  }
  func.func @transform_2(%arg0: i32) -> (i32, i32) {
    %c0_i32 = arith.constant 0 : i32
    %c0_i32_0 = arith.constant 0 : i32
    %c0_i32_1 = arith.constant 0 : i32
    return %c0_i32, %c0_i32_0 : i32, i32
  }
  func.func @transform_3(%arg0: i32) -> (i32, i32) {
    %c0_i32 = arith.constant 0 : i32
    %c0_i32_0 = arith.constant 0 : i32
    %c0_i32_1 = arith.constant 0 : i32
    return %c0_i32, %c0_i32_0 : i32, i32
  }
  func.func @transform_4(%arg0: i32) -> (i32, i32) {
    %c0_i32 = arith.constant 0 : i32
    %c0_i32_0 = arith.constant 0 : i32
    %c0_i32_1 = arith.constant 0 : i32
    return %c0_i32, %c0_i32_0 : i32, i32
  }
  func.func @transform_5(%arg0: i32) -> (i32, i32, i32) {
    %c0_i32 = arith.constant 0 : i32
    %c0_i32_0 = arith.constant 0 : i32
    %c0_i32_1 = arith.constant 0 : i32
    %c0_i32_2 = arith.constant 0 : i32
    return %c0_i32, %c0_i32_0, %c0_i32_1 : i32, i32, i32
  }
  func.func @transform_6(%arg0: i32) -> (i32, i32) {
    %c0_i32 = arith.constant 0 : i32
    %c0_i32_0 = arith.constant 0 : i32
    %c0_i32_1 = arith.constant 0 : i32
    return %c0_i32, %c0_i32_0 : i32, i32
  }
  func.func @transform_7(%arg0: i32) -> (i32, i32, i32) {
    %c0_i32 = arith.constant 0 : i32
    %c0_i32_0 = arith.constant 0 : i32
    %c0_i32_1 = arith.constant 0 : i32
    %c0_i32_2 = arith.constant 0 : i32
    return %c0_i32, %c0_i32_0, %c0_i32_1 : i32, i32, i32
  }
  func.func @transform_8(%arg0: i32) -> (i32, i32, i32) {
    %c0_i32 = arith.constant 0 : i32
    %c0_i32_0 = arith.constant 0 : i32
    %c0_i32_1 = arith.constant 0 : i32
    return %arg0, %c0_i32, %c0_i32_0 : i32, i32, i32
  }
}

</mosaic_0001>

<bundles_post_ra>
// kernel: fire_module_forward.1
= control target key start
LH: loop header
LB: loop body
LE: loop exit
PB: predicated region body
PF: predicated region fallthrough
CT: control target
= control target key end

     0   :  { %s845_s27 = smov 0   ;;  %s1009_s0 = inlined_call_operand.vmem [shape: f32[2,8,256], index: 0, kind: input, shape index: {}]   ;;  %s1010_s1 = inlined_call_operand.vmem [shape: f32[4,8], index: 1, kind: input, shape index: {}]   ;;  %s1011_s2 = inlined_call_operand.vmem [shape: f32[4,1], index: 2, kind: input, shape index: {}]   ;;  %s1012_s3 = inlined_call_operand.vmem [shape: f32[4,4], index: 3, kind: input, shape index: {}]   ;;  %s1013_s4 = inlined_call_operand.vmem [shape: f32[4,1], index: 4, kind: input, shape index: {}]   ;;  %s1014_s5 = inlined_call_operand.vmem [shape: f32[9,4,1], index: 5, kind: input, shape index: {}]   ;;  %s1015_s6 = inlined_call_operand.vmem [shape: f32[4,1], index: 6, kind: input, shape index: {}]   ;;  %s1016_s7 = inlined_call_operand.vmem [shape: f32[9,1,256], index: 7, kind: input, shape index: {}]   ;;  %s1017_s8 = inlined_call_operand.vmem [shape: f32[2,8,256], index: 8, kind: output, shape index: {}]  }
   0x1 LB: > { %s729_s28 = sadd.s32 4294967295, %s789_s27   ;;  %p733_p0 = scmp.ge.s32.totalorder %s789_s27, 1  ;;  %s789_s27 = sphi %s845_s27, %s18_s27  }
   0x2   : > { %p262_p1 = scmp.lt.s32.totalorder %s789_s27, 3 }
   0x4   : > { %p263_p2 = pnand %p733_p0, %p262_p1 }
   0x5   : > { %p296_p3 = scmp.lt.s32.totalorder (!%p263_p2), %s729_s28, 1  ;;  %s793_s15 = smov (!%p263_p2), 16  }
   0x6   : > { %266 = sbr.rel (%p263_p2) target bundleno = 323 (0x143), region = 52  ;;  %s794_s16 = smov (!%p263_p2), 17  }
   0x7   : > { %s795_s17 = smov (!%p263_p2), 113   ;;  %s796_s18 = smov (!%p263_p2), 15  }
   0x8   : > { %s797_s19 = smov (!%p263_p2), 112   ;;  %s798_s20 = smov (!%p263_p2), 1  }
   0x9   : > { %s799_s21 = smov (!%p263_p2), 111  }
   0xb   : > { %v309_v0 = vld [vmem:[%s1011_s2] sm:$0xf]  ;;  %v791_v1 = vmov 0   ;;  %v744_v2 = vld [vmem:[%s1014_s5 + $0x10] sm:$0xf]  ;;  %s1019_s28 = smov (!%p296_p3, %s729_s28), 1  ;;  %v444_v36 = vlaneseq }
   0xc   : > { %780 = vset.pattern.permute.xlu0 %v791_v1  ;;  %781 = vset.pattern.permute.xlu1 %v791_v1  ;;  %s761_s11 = sshll.u32 %s1019_s28, 4  ;;  %v308_v3 = vld [vmem:[%s1010_s1] sm:$0xf]  ;;  %vm315_vm0 = vcmask 64512   ;;  %v746_v9 = vld [vmem:[%s1014_s5 + $0x4] sm:$0xf] }
   0xd   : > { %312 = vperm.xlu0 %780, %v309_v0   ;;  %427 = vperm.xlu1 %781, %v744_v2   ;;  %s300_s14 = scalar_lea.vmem %s1009_s0, %s761_s11  ;;  %v360_v6 = vld [vmem:[%s1013_s4] sm:$0xf]  ;;  %v748_v10 = vld [vmem:[%s1014_s5 + $0x8] sm:$0xf]  ;;  %v750_v11 = vld [vmem:[%s1014_s5 + $0xc] sm:$0xf]  ;;  %s955_s13 = scalar_lea.vmem %s1017_s8, %s761_s11 }
   0xe   : > { %782 = vset.pattern.permute.xlu2 %v791_v1  ;;  %v870_v4 = vld [vmem:[%s300_s14] sm:$0xff]  ;;  %v872_v5 = vld [vmem:[%s300_s14 + $0x8] sm:$0xff]  ;;  %v752_v12 = vld [vmem:[%s1014_s5 + $0x14] sm:$0xf]  ;;  %vm370_vm1 = vcmask 1043456   ;;  %vm366_vm2 = vcmask 31744  }
   0xf   : > { %334 = vmatpush.msra.mxu0 %v870_v4  ;;  %354 = vmatpush.msra.mxu1 %v872_v5  ;;  %v432_v7 = vld [vmem:[%s1015_s6] sm:$0xf]  ;;  %s792_s14 = smov 127   ;;  %v754_v20 = vld [vmem:[%s1014_s5 + $0x18] sm:$0xf]  ;;  %v941_v37 = vand.u32 127, %v444_v36 }
  0x10   : > { %738 = vmatmul.msk.f32.vlgmr.msra.gmra.mxu0 %vm315_vm0, %v308_v3  ;;  %739 = vmatmul.msk.f32.vlgmr.msra.gmra.mxu1 %vm315_vm0, %v308_v3  ;;  %v457_v8 = vld [vmem:[%s1014_s5] sm:$0xf]  ;;  %v756_v21 = vld [vmem:[%s1014_s5 + $0x1c] sm:$0xf]  ;;  %v747_v61 = vld [vmem:[%s1016_s7 + $0x4] sm:$0x3] }
  0x11   : > { %541 = vperm.xlu2 %782, %v750_v11   ;;  %v359_v18 = vld [vmem:[%s1012_s3] sm:$0xf]  ;;  %vm446_vm3 = vcmp.lt.s32.totalorder %v941_v37, 17  ;;  %vm471_vm4 = vcmp.lt.s32.totalorder %v941_v37, 16  ;;  %vm498_vm5 = vcmp.lt.s32.totalorder %v941_v37, 15  ;;  %vm525_vm6 = vcmp.lt.s32.totalorder %v941_v37, 1 }
  0x12   : > { %v758_v19 = vld [vmem:[%s1014_s5 + $0x20] sm:$0xf]  ;;  %vm552_vm7 = vcmp.lt.s32.totalorder %v941_v37, 127  ;;  %vm579_vm8 = vcmp.lt.s32.totalorder %v941_v37, 113  ;;  %vm606_vm9 = vcmp.lt.s32.totalorder %v941_v37, 112  ;;  %vm633_vm10 = vcmp.lt.s32.totalorder %v941_v37, 111 }
  0x13   : > { %v449_v41 = vld [vmem:[%s1016_s7] sm:$0x3]  ;;  %v745_v57 = vld [vmem:[%s1016_s7 + $0x2] sm:$0x3]  ;;  %v658_v37 = vrot.slane %v870_v4, 4 }
  0x14   : > { %v451_v47 = vperm.slane %v449_v41, 0  ;;  %v452_v48 = vperm.slane %v449_v41, 1  ;;  %v477_v62 = vperm.slane %v745_v57, 0  ;;  %v478_v63 = vperm.slane %v745_v57, 1 }
  0x15   : > { %363 = vperm.xlu0 %780, %v360_v6   ;;  %435 = vperm.xlu1 %781, %v432_v7   ;;  %v749_v6 = vld [vmem:[%s1016_s7 + $0x6] sm:$0x3] }
  0x19   : > { %568 = vperm.xlu2 %782, %v752_v12  }
  0x1d   : > { %460 = vperm.xlu0 %780, %v457_v8   ;;  %v504_v8 = vperm.slane %v747_v61, 0 }
  0x25   : > { %487 = vperm.xlu0 %780, %v746_v9   ;;  %v505_v9 = vperm.slane %v747_v61, 1 }
  0x2d   : > { %514 = vperm.xlu0 %780, %v748_v10  }
  0x6b   : > { %v931_v22 = vpop.permute.xlu2 %541 }
  0x73   : > { %v933_v24 = vpop.permute.xlu2 %568 }
  0x7f   : > { %v313_v13 = vpop.permute.xlu0 %312  ;;  %v428_v25 = vpop.permute.xlu1 %427 }
  0x87   : > { %v364_v23 = vpop.permute.xlu0 %363  ;;  %v436_v28 = vpop.permute.xlu1 %435 }
  0x8d   : > { %v336_v14 = vpop.f32.mrf.mxu0  ;;  %v356_v15 = vpop.f32.mrf.mxu1 }
  0x8e   : > { %v897_v16 = vadd.f32 %v336_v14, %v313_v13  ;;  %v899_v17 = vadd.f32 %v356_v15, %v313_v13 }
  0x8f   : > { %v461_v26 = vpop.permute.xlu0 %460 }
  0x90   : > { %742 = vmatpush.msk.msra.mxu3 %vm370_vm1, %v899_v17  ;;  %548 = vrot.lane.b32.xlu0 %v897_v16, %s792_s14  ;;  %v430_v58 = vmul.f32 %v428_v25, %v897_v16  ;;  %v431_v60 = vmul.f32 %v428_v25, %v899_v17 }
  0x91   : > { %467 = vrot.lane.b32.xlu1 %v897_v16, %s793_s15  ;;  %440 = vrot.lane.b32.xlu2 %v897_v16, %s794_s16 }
  0x92   : > { %740 = vmatpush.msk.msra.mxu2 %vm370_vm1, %v897_v16  ;;  %743 = vmatmul.msk.f32.vlgmr.msra.gmra.mxu3 %vm366_vm2, %v359_v18  ;;  %v438_v7 = vadd.f32 %v436_v28, %v430_v58  ;;  %v439_v11 = vadd.f32 %v436_v28, %v431_v60 }
  0x93   : > { %741 = vmatmul.msk.f32.vlgmr.msra.gmra.mxu2 %vm366_vm2, %v359_v18  ;;  %v751_v18 = vld [vmem:[%s1016_s7 + $0xa] sm:$0x3] }
  0x97   : > { %v935_v29 = vpop.permute.xlu0 %487 }
  0x98   : > { %575 = vrot.lane.b32.xlu0 %v897_v16, %s795_s17 }
  0x99   : > { %494 = vrot.lane.b32.xlu1 %v897_v16, %s796_s18  ;;  %442 = vrot.lane.b32.xlu2 %v899_v17, %s794_s16 }
  0x9f   : > { %v937_v32 = vpop.permute.xlu0 %514 }
  0xa0   : > { %602 = vrot.lane.b32.xlu0 %v897_v16, %s797_s19 }
  0xa1   : > { %521 = vrot.lane.b32.xlu1 %v897_v16, %s798_s20  ;;  %469 = vrot.lane.b32.xlu2 %v899_v17, %s793_s15 }
  0xa8   : > { %629 = vrot.lane.b32.xlu0 %v897_v16, %s799_s21 }
  0xa9   : > { %550 = vrot.lane.b32.xlu1 %v899_v17, %s792_s14  ;;  %496 = vrot.lane.b32.xlu2 %v899_v17, %s796_s18 }
  0xb0   : > { %649 = vperm.xlu0 %780, %v758_v19   ;;  %v753_v19 = vld [vmem:[%s1016_s7 + $0xc] sm:$0x3] }
  0xb1   : > { %577 = vrot.lane.b32.xlu1 %v899_v17, %s795_s17  ;;  %523 = vrot.lane.b32.xlu2 %v899_v17, %s798_s20 }
  0xb9   : > { %604 = vrot.lane.b32.xlu1 %v899_v17, %s797_s19  ;;  %595 = vperm.xlu2 %782, %v754_v20  }
  0xc1   : > { %631 = vrot.lane.b32.xlu1 %v899_v17, %s799_s21  ;;  %622 = vperm.xlu2 %782, %v756_v21   ;;  %v531_v17 = vperm.slane %v749_v6, 0 }
  0xeb   : > { %v441_v27 = vpop.permute.xlu2 %440 }
  0xf3   : > { %v443_v30 = vpop.permute.xlu2 %442 }
  0xf4   : > { %v447_v50 = vsel %vm446_vm3, %v441_v27, %v443_v30  ;;  %v448_v51 = vsel %vm446_vm3, %v443_v30, %v441_v27  ;;  %v558_v30 = vperm.slane %v751_v18, 0 }
  0xf5   : > { %v455_v55 = vmul.f32 %v451_v47, %v448_v51  ;;  %v456_v56 = vmul.f32 %v452_v48, %v447_v50 }
  0xf7   : > { %v463_v0 = vmul.f32 %v461_v26, %v455_v55  ;;  %v464_v1 = vmul.f32 %v461_v26, %v456_v56 }
  0xf9   : > { %v465_v20 = vadd.f32 %v463_v0, %v438_v7  ;;  %v466_v21 = vadd.f32 %v464_v1, %v439_v11 }
  0xfb   : > { %v470_v33 = vpop.permute.xlu2 %469 }
 0x102   : > { %v939_v35 = vpop.permute.xlu0 %548 }
 0x103   : > { %v468_v31 = vpop.permute.xlu1 %467  ;;  %v497_v39 = vpop.permute.xlu2 %496 }
 0x104   : > { %v472_v2 = vsel %vm471_vm4, %v468_v31, %v470_v33  ;;  %v473_v3 = vsel %vm471_vm4, %v470_v33, %v468_v31  ;;  %v559_v31 = vperm.slane %v751_v18, 1  ;;  %v585_v33 = vperm.slane %v753_v19, 0 }
 0x105   : > { %v481_v15 = vmul.f32 %v477_v62, %v473_v3  ;;  %v482_v16 = vmul.f32 %v478_v63, %v472_v2 }
 0x107   : > { %v491_v36 = vmul.f32 %v935_v29, %v482_v16 }
 0x10a   : > { %v947_v45 = vpop.permute.xlu0 %575 }
 0x10b   : > { %v495_v34 = vpop.permute.xlu1 %494  ;;  %v524_v59 = vpop.permute.xlu2 %523 }
 0x10c   : > { %v499_v12 = vsel %vm498_vm5, %v495_v34, %v497_v39  ;;  %v500_v13 = vsel %vm498_vm5, %v497_v39, %v495_v34  ;;  %v490_v34 = vmul.f32 %v935_v29, %v481_v15 }
 0x10d   : > { %v508_v25 = vmul.f32 %v504_v8, %v500_v13  ;;  %v509_v26 = vmul.f32 %v505_v9, %v499_v12 }
 0x10f   : > { %v518_v47 = vmul.f32 %v937_v32, %v509_v26 }
 0x112   : > { %v603_v10 = vpop.permute.xlu0 %602 }
 0x113   : > { %v522_v38 = vpop.permute.xlu1 %521  ;;  %v596_v39 = vpop.permute.xlu2 %595 }
 0x114   : > { %v526_v27 = vsel %vm525_vm6, %v522_v38, %v524_v59  ;;  %v527_v28 = vsel %vm525_vm6, %v524_v59, %v522_v38 }
 0x115   : > { %v414_v40 = vpop.f32.mrf.mxu3 }
 0x116   : > { %v394_v42 = vpop.f32.mrf.mxu2  ;;  %v415_v43 = vadd.f32 %v414_v40, %v364_v23 }
 0x117   : > { %v395_v44 = vadd.f32 %v394_v42, %v364_v23  ;;  %v532_v23 = vperm.slane %v749_v6, 1  ;;  %v755_v42 = vld [vmem:[%s1016_s7 + $0xe] sm:$0x3] }
 0x118   : > { %v418_v46 = vadd.f32 %v415_v43, %v872_v5  ;;  %v535_v43 = vmul.f32 %v531_v17, %v527_v28  ;;  %v613_v51 = vperm.slane %v755_v42, 1 }
 0x119   : > { %v417_v49 = vadd.f32 %v395_v44, %v870_v4  ;;  %v536_v38 = vmul.f32 %v532_v23, %v526_v27  ;;  %v586_v44 = vperm.slane %v753_v19, 1 }
 0x11a   : > { %v420_v52 = vmax.f32 %v418_v46, 0.0  ;;  %v517_v46 = vmul.f32 %v937_v32, %v508_v25  ;;  %v630_v55 = vpop.permute.xlu0 %629  ;;  %v544_v58 = vmul.f32 %v931_v22, %v535_v43 }
 0x11b   : > { %v419_v53 = vmax.f32 %v417_v49, 0.0  ;;  %v551_v54 = vpop.permute.xlu1 %550  ;;  %v545_v59 = vmul.f32 %v931_v22, %v536_v38 }
 0x11c   : > { %422 = vst [vmem:[%s955_s13 + $0x8] sm:$0xf] %v420_v52  ;;  %v553_v40 = vsel %vm552_vm7, %v939_v35, %v551_v54  ;;  %v554_v41 = vsel %vm552_vm7, %v551_v54, %v939_v35  ;;  %v612_v35 = vperm.slane %v755_v42, 0  ;;  %v493_v54 = vadd.f32 %v491_v36, %v466_v21 }
 0x11d   : > { %421 = vst [vmem:[%s955_s13] sm:$0xf] %v419_v53  ;;  %v562_v49 = vmul.f32 %v558_v30, %v553_v40  ;;  %v563_v50 = vmul.f32 %v559_v31, %v554_v41  ;;  %v492_v53 = vadd.f32 %v490_v34, %v465_v20  ;;  %v659_v21 = vrot.slane %v872_v5, 4 }
 0x11e   : > { %v520_v62 = vadd.f32 %v518_v47, %v493_v54 }
 0x11f   : > { %v519_v61 = vadd.f32 %v517_v46, %v492_v53  ;;  %v571_v63 = vmul.f32 %v933_v24, %v562_v49  ;;  %v572_v0 = vmul.f32 %v933_v24, %v563_v50 }
 0x120   : > { %v547_v22 = vadd.f32 %v545_v59, %v520_v62 }
 0x121   : > { %v546_v7 = vadd.f32 %v544_v58, %v519_v61 }
 0x122   : > { %v574_v12 = vadd.f32 %v572_v0, %v547_v22  ;;  %v650_v23 = vpop.permute.xlu0 %649 }
 0x123   : > { %v578_v14 = vpop.permute.xlu1 %577  ;;  %v573_v11 = vadd.f32 %v571_v63, %v546_v7 }
 0x124   : > { %v580_v29 = vsel %vm579_vm8, %v947_v45, %v578_v14  ;;  %v581_v48 = vsel %vm579_vm8, %v578_v14, %v947_v45  ;;  %v757_v45 = vld [vmem:[%s1016_s7 + $0x10] sm:$0x3] }
 0x125   : > { %v589_v60 = vmul.f32 %v585_v33, %v580_v29  ;;  %v590_v32 = vmul.f32 %v586_v44, %v581_v48  ;;  %v639_v3 = vperm.slane %v757_v45, 0  ;;  %v640_v6 = vperm.slane %v757_v45, 1 }
 0x127   : > { %v598_v8 = vmul.f32 %v596_v39, %v589_v60  ;;  %v599_v9 = vmul.f32 %v596_v39, %v590_v32 }
 0x129   : > { %v600_v18 = vadd.f32 %v598_v8, %v573_v11  ;;  %v601_v24 = vadd.f32 %v599_v9, %v574_v12 }
 0x12b   : > { %v605_v52 = vpop.permute.xlu1 %604 }
 0x12c   : > { %v607_v56 = vsel %vm606_vm9, %v603_v10, %v605_v52  ;;  %v608_v57 = vsel %vm606_vm9, %v605_v52, %v603_v10  ;;  %v623_v10 = vpop.permute.xlu2 %622 }
 0x12d   : > { %v616_v1 = vmul.f32 %v612_v35, %v607_v56  ;;  %v617_v2 = vmul.f32 %v613_v51, %v608_v57 }
 0x12f   : > { %v625_v13 = vmul.f32 %v623_v10, %v616_v1  ;;  %v626_v14 = vmul.f32 %v623_v10, %v617_v2 }
 0x131   : > { %v627_v25 = vadd.f32 %v625_v13, %v600_v18  ;;  %v628_v26 = vadd.f32 %v626_v14, %v601_v24 }
 0x133   : > { %v632_v15 = vpop.permute.xlu1 %631 }
 0x134   : > { %v634_v16 = vsel %vm633_vm10, %v630_v55, %v632_v15  ;;  %v635_v17 = vsel %vm633_vm10, %v632_v15, %v630_v55 }
 0x135   : > { %v643_v19 = vmul.f32 %v639_v3, %v634_v16  ;;  %v644_v20 = vmul.f32 %v640_v6, %v635_v17 }
 0x137   : > { %v652_v27 = vmul.f32 %v650_v23, %v643_v19  ;;  %v653_v28 = vmul.f32 %v650_v23, %v644_v20 }
 0x139   : > { %v654_v30 = vadd.f32 %v652_v27, %v627_v25  ;;  %v655_v31 = vadd.f32 %v653_v28, %v628_v26 }
 0x13b   : > { %v662_v33 = vadd.f32 %v658_v37, %v654_v30  ;;  %v663_v34 = vadd.f32 %v659_v21, %v655_v31 }
 0x13d   : > { %v664_v36 = vmax.f32 %v662_v33, 0.0  ;;  %v665_v39 = vmax.f32 %v663_v34, 0.0 }
 0x13f   : > { %v668_v40 = vrot.slane %v664_v36, 4  ;;  %v669_v41 = vrot.slane %v665_v39, 4 }
 0x141   : > { %672 = vst [vmem:[%s955_s13] sm:$0xf0] %v668_v40 }
 0x142   : > { %673 = vst [vmem:[%s955_s13 + $0x8] sm:$0xf0] %v669_v41 }
 0x143 PF: > { %s18_s27 = sadd.s32 1, %s789_s27  }
 0x144   : > { %p15_p4 = scmp.ge.s32.totalorder %s18_s27, 4  }
 0x146   :  { %17 = sbr.rel (!%p15_p4) target bundleno = 1 (0x1), region = 97 }

</bundles_post_ra>
